<compile_context>
chip_gen: v7x
topology: tpu7x:2x2x1
jax: 0.10.0
libtpu: 0.0.40
codegen_flags: <defaults>
</compile_context>

<pallas_src>
import functools

import jax
import jax.numpy as jnp
from jax.experimental import pallas as pl
from jax.experimental.pallas import tpu as pltpu


_EPS = 1e-8
_STAB_INIT = 1e30   # finite stand-in for +inf: exp(x - _STAB_INIT) == 0 exactly in f32


# ----------------------------- plain-JAX glue ------------------------------------ #

def quat_to_matrix(q):
    """Quaternion (x, y, z, w) -> 3x3 rotation matrix (Q.tomatrix equivalent)."""
    q = q / jnp.sqrt(jnp.sum(q * q, axis=-1, keepdims=True))
    x, y, z, w = (q[..., i] for i in range(4))
    r0 = jnp.stack([1 - 2 * (y * y + z * z), 2 * (x * y - z * w), 2 * (x * z + y * w)], -1)
    r1 = jnp.stack([2 * (x * y + z * w), 1 - 2 * (x * x + z * z), 2 * (y * z - x * w)], -1)
    r2 = jnp.stack([2 * (x * z - y * w), 2 * (y * z + x * w), 1 - 2 * (x * x + y * y)], -1)
    return jnp.stack([r0, r1, r2], axis=-2)


def _round_up(x, m):
    return ((x + m - 1) // m) * m


# --------------------------------- the kernel ------------------------------------ #

def _rotation_laplace_kernel(z_ref, trz_ref, gridsT_ref, out_ref, stab_ref, sum_ref, *,
                             n_valid, block_n, steps_per_core, has_pad, dot_precision):
    """One step handles a (9, block_n) slab of flattened (transposed) grid rotations.

    z_ref     : (B, 9)        flattened Z = (L L^T)^-1           (row-major)
    trz_ref   : (B, 1)        tr(Z)
    gridsT_ref: (9, block_n)  column n = flattened G_n^T
    out_ref   : (B, 1)        per-core partial  log(sum_n exp(-p_n)/p_n)   (last step)
    stab_ref  : (B, 1)        running min of powers  (VMEM scratch)
    sum_ref   : (B, 1)        running stabilized sum (VMEM scratch)
    """
    c = pl.program_id(0)           # core / partial index   ("parallel")
    k = pl.program_id(1)           # grid-slab index        ("arbitrary" reduction)

    @pl.when(k == 0)
    def _():
        stab_ref[...] = jnp.full_like(stab_ref, _STAB_INIT)
        sum_ref[...] = jnp.zeros_like(sum_ref)

    trz = trz_ref[...]                                          # (B, 1)

    # tr(Z @ G_n) for every grid point in this slab -> (B, block_n) on the MXU.
    zg = jnp.dot(z_ref[...], gridsT_ref[...],
                 preferred_element_type=jnp.float32,
                 precision=dot_precision)

    if has_pad:
        col0 = (c * steps_per_core + k) * block_n
        lane = jax.lax.broadcasted_iota(jnp.int32, (1, block_n), 1) + col0
        # padded grid columns -> huge power -> exp() underflows to exactly 0
        zg = jnp.where(lane < n_valid, zg, jnp.float32(-1e30))

    # Block stabilizer straight from the matmul output:
    #   min_n sqrt(max(trz - zg_n, eps)) == sqrt(max(trz - max_n zg_n, eps))
    # so the XLU reduce issues in parallel with the rsqrt/exp chain below.
    block_min = jnp.sqrt(jnp.maximum(trz - jnp.max(zg, axis=-1, keepdims=True), _EPS))

    # rsqrt fusion: one EUP rsqrt yields both sqrt(x) (=powers) and 1/powers.
    x = jnp.maximum(trz - zg, _EPS)                             # (B, block_n)
    inv = jax.lax.rsqrt(x)
    powers = x * inv                                            # == sqrt(x)

    # online, min-stabilized accumulation of  sum_n exp(stab - p_n) / p_n
    old_stab = stab_ref[...]
    new_stab = jnp.minimum(old_stab, block_min)
    rescale = jnp.exp(new_stab - old_stab)                      # == 0 on first slab
    block_sum = jnp.sum(jnp.exp(new_stab - powers) * inv, axis=-1, keepdims=True)
    sum_ref[...] = sum_ref[...] * rescale + block_sum
    stab_ref[...] = new_stab

    @pl.when(k == pl.num_programs(1) - 1)
    def _():
        # per-core partial a_c = log(S_c) - stab_c = log(sum_{n in chunk} exp(-p_n)/p_n)
        out_ref[...] = jnp.log(sum_ref[...]) - stab_ref[...]


# --------------------------------- wrapper ---------------------------------------- #

def rotation_laplace_nll(gt_quat, mode_quat, cholesky_factor, grids, *,
                         block_n=2048, num_cores=2, grid_dtype=jnp.float32,
                         dot_precision=jax.lax.Precision.HIGHEST):
    """Equivalent of RotationLaplaceLoss.forward; returns nll of shape (B,)."""
    B = gt_quat.shape[0]
    N = grids.shape[0]
    assert block_n % 128 == 0

    r_gt = quat_to_matrix(gt_quat)                       # (B, 3, 3)
    r0 = quat_to_matrix(mode_quat)                       # (B, 3, 3)
    r_rel = jnp.einsum('bji,bjk->bik', r0, r_gt)         # R0^T @ R_gt

    # cholesky_inverse(L) = (L L^T)^-1  (3x3 glue, negligible cost)
    cov = cholesky_factor @ jnp.swapaxes(cholesky_factor, -1, -2)
    z = jnp.linalg.inv(cov).astype(jnp.float32)          # (B, 3, 3)
    trz_vec = jnp.trace(z, axis1=-2, axis2=-1).astype(jnp.float32)   # (B,)
    z_flat = z.reshape(B, 9)

    # Slab selection: whole per-core chunk in one slab for small grids, capped at
    # block_n (VMEM/vreg pressure bound) for big ones.  Padded columns are masked
    # inside the kernel, so any N works.
    per_core = -(-N // num_cores)
    blk = min(block_n, _round_up(per_core, 128))
    steps_per_core = -(-per_core // blk)
    n_padded = num_cores * steps_per_core * blk
    has_pad = n_padded != N

    # tr(Z R) = sum_ij Z[i,j] R[j,i]  ->  flatten R^T row-major; columns = grid points.
    gridsT = jnp.swapaxes(grids, -1, -2).reshape(N, 9).T.astype(jnp.float32)  # (9, N)
    if has_pad:
        gridsT = jnp.pad(gridsT, ((0, 0), (0, n_padded - N)))

    z_in = z_flat.astype(grid_dtype)        # bf16 option halves grid/operand traffic
    gridsT = gridsT.astype(grid_dtype)      # (useful on v5e/v6e for very large N)
    trz = trz_vec[:, None]                  # (B, 1), always f32
    precision = dot_precision if grid_dtype == jnp.float32 else None

    kernel = functools.partial(
        _rotation_laplace_kernel, n_valid=N, block_n=blk,
        steps_per_core=steps_per_core, has_pad=has_pad, dot_precision=precision)

    partials = pl.pallas_call(
        kernel,
        out_shape=jax.ShapeDtypeStruct((num_cores, B, 1), jnp.float32),
        grid_spec=pltpu.PrefetchScalarGridSpec(
            num_scalar_prefetch=0,
            grid=(num_cores, steps_per_core),
            in_specs=[
                pl.BlockSpec((B, 9), lambda c, k: (0, 0)),           # z_flat
                pl.BlockSpec((B, 1), lambda c, k: (0, 0)),           # tr(Z)
                # TODO(synk): add pipeline_mode=pl.Buffered(3) here if a profile at
                #             very large N still shows exposed grid-slab DMA.
                pl.BlockSpec((9, blk), lambda c, k: (0, c * steps_per_core + k)),
            ],
            out_specs=pl.BlockSpec((None, B, 1), lambda c, k: (c, 0, 0)),
            scratch_shapes=[
                pltpu.VMEM((B, 1), jnp.float32),   # running min power (stabilizer)
                pltpu.VMEM((B, 1), jnp.float32),   # running stabilized sum
            ],
        ),
        compiler_params=pltpu.CompilerParams(
            dimension_semantics=("parallel", "arbitrary")),
    )(z_in, trz, gridsT)

    # Merge per-core partials:  logF = logsumexp_c(a_c) - log(N)
    a = partials[:, :, 0]                                        # (num_cores, B)
    a_max = jnp.max(a, axis=0)
    logF = a_max + jnp.log(jnp.sum(jnp.exp(a - a_max), axis=0)) - jnp.log(jnp.float32(N))

    # per-sample power: sqrt(tr(Z) - tr(Z R0^T R_gt))    (O(B*9) glue)
    tr_zr = jnp.sum(z_flat * jnp.swapaxes(r_rel, -1, -2).reshape(B, 9), axis=-1)
    power = jnp.sqrt(jnp.maximum(trz_vec - tr_zr, _EPS))
    return logF + power + jnp.log(power)


# --------------------------- pure-JAX reference (check) --------------------------- #

def rotation_laplace_nll_ref(gt_quat, mode_quat, cholesky_factor, grids):
    B, N = gt_quat.shape[0], grids.shape[0]
    r_gt = quat_to_matrix(gt_quat)
    r0 = quat_to_matrix(mode_quat)
    r_rel = jnp.einsum('bji,bjk->bik', r0, r_gt)
    cov = cholesky_factor @ jnp.swapaxes(cholesky_factor, -1, -2)
    z = jnp.linalg.inv(cov).astype(jnp.float32)
    trz = jnp.trace(z, axis1=-2, axis2=-1)

    def power_fn(matrix_r, z, trz):
        tr_zr = jnp.einsum('...ij,...ji->...', z, matrix_r,
                           precision=jax.lax.Precision.HIGHEST)
        return jnp.sqrt(jnp.maximum(trz - tr_zr, 1e-8))

    power = power_fn(r_rel, z, trz)                                     # (B,)
    powers = power_fn(grids[None], z[:, None], trz[:, None])            # (B, N)
    stability = jnp.min(powers, axis=-1)
    log_exp_sum = jnp.log(jnp.sum(jnp.exp(-powers + stability[:, None]) / powers, axis=1))
    logF = log_exp_sum - jnp.log(jnp.float32(N)) - stability
    return logF + power + jnp.log(power)


# ------------------------------------ main ---------------------------------------- #

if __name__ == "__main__":
    B, N = 8, 512
    key = jax.random.PRNGKey(0)
    k1, k2, k3, k4 = jax.random.split(key, 4)

    gt_quat = jax.random.normal(k1, (B, 4), dtype=jnp.float32)
    gt_quat = gt_quat / jnp.linalg.norm(gt_quat, axis=-1, keepdims=True)
    mode_quat = jax.random.normal(k2, (B, 4), dtype=jnp.float32)
    mode_quat = mode_quat / jnp.linalg.norm(mode_quat, axis=-1, keepdims=True)

    # lower-triangular cholesky factor with positive diagonal (pose_scales_tril)
    raw = 0.3 * jax.random.normal(k3, (B, 3, 3), dtype=jnp.float32)
    diag = 0.5 + jnp.abs(jnp.diagonal(raw, axis1=-2, axis2=-1))          # (B, 3)
    pose_scales_tril = jnp.tril(raw, k=-1) + jnp.eye(3, dtype=jnp.float32)[None] * diag[:, None, :]

    # synthetic SO(3) grid (stand-in for rotation-laplace-grids3.npy)
    gq = jax.random.normal(k4, (N, 4), dtype=jnp.float32)
    gq = gq / jnp.linalg.norm(gq, axis=-1, keepdims=True)
    grids = quat_to_matrix(gq)                                            # (N, 3, 3)

    nll = rotation_laplace_nll(gt_quat, mode_quat, pose_scales_tril, grids)
    nll = jax.block_until_ready(nll)

    nll_ref = jax.block_until_ready(
        rotation_laplace_nll_ref(gt_quat, mode_quat, pose_scales_tril, grids))

    assert nll.shape == (B,)
    assert bool(jnp.all(jnp.isfinite(nll)))
    assert bool(jnp.allclose(nll, nll_ref, rtol=1e-3, atol=1e-3)), (nll, nll_ref)
    print("KERNEL_OK")
</pallas_src>

<mosaic_0001>
module attributes {stable_mosaic.version = 11 : i64} {
  func.func @_rotation_laplace_kernel(%arg0: i32, %arg1: i32, %arg2: memref<8x9xf32, #tpu.memory_space<vmem>>, %arg3: memref<8x1xf32, #tpu.memory_space<vmem>>, %arg4: memref<9x256xf32, #tpu.memory_space<vmem>>, %arg5: memref<1x8x1xf32, #tpu.memory_space<vmem>>, %arg6: memref<8x1xf32, #tpu.memory_space<vmem>>, %arg7: memref<8x1xf32, #tpu.memory_space<vmem>>) attributes {dimension_semantics = [#tpu.dimension_semantics<parallel>, #tpu.dimension_semantics<arbitrary>], iteration_bounds = array<i64: 2, 1>, scalar_prefetch = 0 : i64, scratch_operands = 2 : i64, tpu.core_type = #tpu.core_type<tc>, window_params = [{pipeline_mode = #tpu.pipeline_mode<synchronous>, transform_indices = @transform_0, window_bounds = array<i64: 8, 9>}, {pipeline_mode = #tpu.pipeline_mode<synchronous>, transform_indices = @transform_1, window_bounds = array<i64: 8, 1>}, {transform_indices = @transform_2, window_bounds = array<i64: 9, 256>}, {transform_indices = @transform_3, window_bounds = array<i64: 1, 8, 1>}]} {
    %c0_i32 = arith.constant 0 : i32
    %0 = arith.cmpi eq, %arg1, %c0_i32 : i32
    %1 = arith.extui %0 : i1 to i32
    %c0_i32_0 = arith.constant 0 : i32
    %2 = arith.cmpi ne, %1, %c0_i32_0 : i32
    scf.if %2 {
      %cst_20 = arith.constant 1.000000e+30 : f32
      %37 = vector.broadcast %cst_20 : f32 to vector<8x1xf32>
      %c0_21 = arith.constant 0 : index
      %c0_22 = arith.constant 0 : index
      %38 = vector.load %arg6[%c0_21, %c0_22] : memref<8x1xf32, #tpu.memory_space<vmem>>, vector<8x1xf32>
      tpu.vector_store %arg6[%c0_21, %c0_22], %37 {strides = array<i32>} : memref<8x1xf32, #tpu.memory_space<vmem>>, vector<8x1xf32>,
      %cst_23 = arith.constant 0.000000e+00 : f32
      %39 = vector.broadcast %cst_23 : f32 to vector<8x1xf32>
      %c0_24 = arith.constant 0 : index
      %c0_25 = arith.constant 0 : index
      %40 = vector.load %arg7[%c0_24, %c0_25] : memref<8x1xf32, #tpu.memory_space<vmem>>, vector<8x1xf32>
      tpu.vector_store %arg7[%c0_24, %c0_25], %39 {strides = array<i32>} : memref<8x1xf32, #tpu.memory_space<vmem>>, vector<8x1xf32>,
    } else {
    }
    %c0 = arith.constant 0 : index
    %c0_1 = arith.constant 0 : index
    %3 = vector.load %arg3[%c0, %c0_1] : memref<8x1xf32, #tpu.memory_space<vmem>>, vector<8x1xf32>
    %c0_2 = arith.constant 0 : index
    %c0_3 = arith.constant 0 : index
    %4 = vector.load %arg2[%c0_2, %c0_3] : memref<8x9xf32, #tpu.memory_space<vmem>>, vector<8x9xf32>
    %c0_4 = arith.constant 0 : index
    %c0_5 = arith.constant 0 : index
    %5 = vector.load %arg4[%c0_4, %c0_5] : memref<9x256xf32, #tpu.memory_space<vmem>>, vector<9x256xf32>
    %cst = arith.constant dense<0.000000e+00> : vector<8x256xf32>
    %6 = tpu.matmul %4, %5, %cst {dimension_numbers = #tpu.dot_dimension_numbers<[1], [0], [0], [1], [0, 0, 1, 1], [], []>, precision = #tpu.contract_precision<fp32>} : vector<8x9xf32>, vector<9x256xf32>, vector<8x256xf32> -> vector<8x256xf32>
    %cst_6 = arith.constant dense<0xFF800000> : vector<8xf32>
    %7 = vector.multi_reduction <maximumf>, %6, %cst_6 [1] : vector<8x256xf32> to vector<8xf32>
    %8 = vector.shape_cast %7 : vector<8xf32> to vector<8x1xf32>
    %9 = arith.subf %3, %8 : vector<8x1xf32>
    %cst_7 = arith.constant 9.99999993E-9 : f32
    %10 = vector.broadcast %cst_7 : f32 to vector<8x1xf32>
    %11 = arith.maximumf %9, %10 : vector<8x1xf32>
    %12 = math.sqrt %11 : vector<8x1xf32>
    %13 = vector.broadcast %3 : vector<8x1xf32> to vector<8x256xf32>
    %14 = arith.subf %13, %6 : vector<8x256xf32>
    %cst_8 = arith.constant 9.99999993E-9 : f32
    %15 = vector.broadcast %cst_8 : f32 to vector<8x256xf32>
    %16 = arith.maximumf %14, %15 : vector<8x256xf32>
    %17 = math.rsqrt %16 : vector<8x256xf32>
    %18 = arith.mulf %16, %17 : vector<8x256xf32>
    %c0_9 = arith.constant 0 : index
    %c0_10 = arith.constant 0 : index
    %19 = vector.load %arg6[%c0_9, %c0_10] : memref<8x1xf32, #tpu.memory_space<vmem>>, vector<8x1xf32>
    %20 = arith.minimumf %19, %12 : vector<8x1xf32>
    %21 = arith.subf %20, %19 : vector<8x1xf32>
    %22 = math.exp %21 : vector<8x1xf32>
    %23 = vector.broadcast %20 : vector<8x1xf32> to vector<8x256xf32>
    %24 = arith.subf %23, %18 : vector<8x256xf32>
    %25 = math.exp %24 : vector<8x256xf32>
    %26 = arith.mulf %25, %17 : vector<8x256xf32>
    %cst_11 = arith.constant dense<0.000000e+00> : vector<8xf32>
    %27 = vector.multi_reduction <add>, %26, %cst_11 [1] : vector<8x256xf32> to vector<8xf32>
    %28 = vector.shape_cast %27 : vector<8xf32> to vector<8x1xf32>
    %c0_12 = arith.constant 0 : index
    %c0_13 = arith.constant 0 : index
    %29 = vector.load %arg7[%c0_12, %c0_13] : memref<8x1xf32, #tpu.memory_space<vmem>>, vector<8x1xf32>
    %30 = arith.mulf %29, %22 : vector<8x1xf32>
    %31 = arith.addf %30, %28 : vector<8x1xf32>
    %c0_14 = arith.constant 0 : index
    %c0_15 = arith.constant 0 : index
    %32 = vector.load %arg7[%c0_14, %c0_15] : memref<8x1xf32, #tpu.memory_space<vmem>>, vector<8x1xf32>
    tpu.vector_store %arg7[%c0_14, %c0_15], %31 {strides = array<i32>} : memref<8x1xf32, #tpu.memory_space<vmem>>, vector<8x1xf32>,
    %c0_16 = arith.constant 0 : index
    %c0_17 = arith.constant 0 : index
    %33 = vector.load %arg6[%c0_16, %c0_17] : memref<8x1xf32, #tpu.memory_space<vmem>>, vector<8x1xf32>
    tpu.vector_store %arg6[%c0_16, %c0_17], %20 {strides = array<i32>} : memref<8x1xf32, #tpu.memory_space<vmem>>, vector<8x1xf32>,
    %c0_i32_18 = arith.constant 0 : i32
    %34 = arith.cmpi eq, %arg1, %c0_i32_18 : i32
    %35 = arith.extui %34 : i1 to i32
    %c0_i32_19 = arith.constant 0 : i32
    %36 = arith.cmpi ne, %35, %c0_i32_19 : i32
    scf.if %36 {
      %c0_20 = arith.constant 0 : index
      %c0_21 = arith.constant 0 : index
      %37 = vector.load %arg7[%c0_20, %c0_21] : memref<8x1xf32, #tpu.memory_space<vmem>>, vector<8x1xf32>
      %38 = math.log %37 : vector<8x1xf32>
      %c0_22 = arith.constant 0 : index
      %c0_23 = arith.constant 0 : index
      %39 = vector.load %arg6[%c0_22, %c0_23] : memref<8x1xf32, #tpu.memory_space<vmem>>, vector<8x1xf32>
      %40 = arith.subf %38, %39 : vector<8x1xf32>
      %c0_24 = arith.constant 0 : index
      %c0_25 = arith.constant 0 : index
      %c0_26 = arith.constant 0 : index
      %41 = vector.load %arg5[%c0_24, %c0_25, %c0_26] : memref<1x8x1xf32, #tpu.memory_space<vmem>>, vector<1x8x1xf32>
      %42 = vector.shape_cast %41 : vector<1x8x1xf32> to vector<8x1xf32>
      %43 = vector.shape_cast %40 : vector<8x1xf32> to vector<1x8x1xf32>
      tpu.vector_store %arg5[%c0_24, %c0_25, %c0_26], %43 {strides = array<i32>} : memref<1x8x1xf32, #tpu.memory_space<vmem>>, vector<1x8x1xf32>,
    } else {
    }
    return
  }
  func.func @transform_0(%arg0: i32, %arg1: i32) -> (i32, i32) {
    %c0_i32 = arith.constant 0 : i32
    %c0_i32_0 = arith.constant 0 : i32
    %c0_i32_1 = arith.constant 0 : i32
    return %c0_i32, %c0_i32_0 : i32, i32
  }
  func.func @transform_1(%arg0: i32, %arg1: i32) -> (i32, i32) {
    %c0_i32 = arith.constant 0 : i32
    %c0_i32_0 = arith.constant 0 : i32
    %c0_i32_1 = arith.constant 0 : i32
    return %c0_i32, %c0_i32_0 : i32, i32
  }
  func.func @transform_2(%arg0: i32, %arg1: i32) -> (i32, i32) {
    %c1_i32 = arith.constant 1 : i32
    %0 = arith.muli %arg0, %c1_i32 : i32
    %1 = arith.addi %0, %arg1 : i32
    %c0_i32 = arith.constant 0 : i32
    %c0_i32_0 = arith.constant 0 : i32
    return %c0_i32, %1 : i32, i32
  }
  func.func @transform_3(%arg0: i32, %arg1: i32) -> (i32, i32, i32) {
    %c0_i32 = arith.constant 0 : i32
    %c0_i32_0 = arith.constant 0 : i32
    %c0_i32_1 = arith.constant 0 : i32
    return %arg0, %c0_i32, %c0_i32_0 : i32, i32, i32
  }
}

</mosaic_0001>

<bundles_post_ra>
// kernel: tpu_custom_call.1
= control target key start
LH: loop header
LB: loop body
LE: loop exit
PB: predicated region body
PF: predicated region fallthrough
CT: control target
= control target key end

     0   :  { %8 = vsyncpa [#allocation5], 0  ;;  %s1233_s0 = inlined_call_operand.vmem [shape: f32[8,9], index: 0, kind: input, shape index: {}]   ;;  %s1234_s1 = inlined_call_operand.vmem [shape: f32[8,1], index: 1, kind: input, shape index: {}]   ;;  %s1235_s2 = inlined_call_operand.hbm [shape: f32[9,512], index: 2, kind: input, shape index: {}]   ;;  %s1236_s3 = inlined_call_operand.vmem [shape: f32[2,8,1], index: 3, kind: output, shape index: {}]  }
   0x1   :  { %10 = vsyncpa [#allocation5 + $0x1], 0  ;;  %s1089_s12 = smov 0   ;;  %s1091_s13 = smov 0  }
   0x2   :  { %s1093_s14 = smov 0   ;;  %s1095_s15 = smov 0  }
   0x3   :  { %s1097_s16 = smov 0   ;;  %s1099_s17 = smov 0  }
   0x4 LB: > { %s856_s18 = sadd.s32 4294967295, %s1060_s17   ;;  %s28_s19 = sadd.s32 1, %s1056_s16  ;;  %s1060_s17 = sphi %s1099_s17, %s16_s17   ;;  %s1056_s16 = sphi %s1097_s16, %s1245_s16   ;;  %s1052_s15 = sphi %s1095_s15, %s1244_s15   ;;  %s1048_s14 = sphi %s1093_s14, %s1243_s14   ;;  %s1044_s13 = sphi %s1091_s13, %s1242_s13   ;;  %s1040_s12 = sphi %s1089_s12, %s1241_s12  }
   0x5   : > { %p30_p0 = scmp.ge.s32.totalorder %s28_s19, 2  ;;  %s79_s20 = sadd.s32 1, %s1048_s14 }
   0x6   : > { %p86_p1 = scmp.ne.s32.totalorder %s1048_s14, %s1044_s13  ;;  %p87_p2 = scmp.eq.s32.totalorder %s1060_s17, 0 }
   0x7   : > { %s1247_s19 = smov (%p30_p0, %s28_s19), 0  ;;  %p92_p4 = scmp.ne.s32.totalorder %s1044_s13, %s1040_s12 }
   0x8   : > { %p1125_p3 = por %p87_p2, %p86_p1  ;;  %s76_s22 = ssub.s32 %s1056_s16, %s1247_s19 }
   0x9   : > { %p93_p5 = scmp.eq.s32.totalorder %s856_s18, 0  ;;  %p77_p6 = scmp.eq.s32.totalorder %s76_s22, 0 }
   0xa   : > { %p909_p8 = scmp.lt.s32.totalorder %s1060_s17, 2  ;;  %s148_s25 = sand.u32 1, %s1048_s14  }
   0xb   : > { %p1132_p7 = por %p93_p5, %p92_p4  ;;  %s868_s26 = sshll.u32 %s1056_s16, 8 }
   0xc   : > { %s1138_s24 = scalar_select %p77_p6, %s1048_s14, %s79_s20  }
   0xd   : > { %s860_s27 = sshll.u32 %s148_s25, 5  ;;  %s1145_s30 = scalar_lea.hbm %s1235_s2, %s868_s26 }
   0xe   : > { %s152_s4 = scalar_lea.vmem [#allocation4], %s860_s27  ;;  %p1149_p9 = pnand %p909_p8, %p1125_p3 }
   0xf   : > { %s160_s5 = sshll.u32 %s152_s4, 4  ;;  %s1156_s7 = scalar_lea.sflag [#allocation5], %s148_s25  ;;  %s1153_s5 = int_to_ptr.vmem [resolvable:$true] %s160_s5 }
  0x10   : > { %s980_s8 = scalar_lea.hbm %s1145_s30, 512  ;;  %p982_p12 = pneg %p1149_p9 }
  0x11   : > { %p981_p11 = scmp.ne.s32.totalorder %s1145_s30, %s980_s8  ;;  %s985_s11 = scalar_lea.hbm %s1235_s2, 1024 }
  0x12   : > { %p986_p1 = scmp.lt.u32.totalorder %s1145_s30, %s1235_s2  ;;  %p987_p2 = scmp.lt.u32.totalorder %s985_s11, %s980_s8 }
  0x13   : > { %p983_p13 = pnand %p982_p12, %p981_p11  ;;  %p989_p4 = scmp.lt.u32.totalorder %s980_s8, %s1145_s30 }
  0x14   : > { %p988_p3 = por %p987_p2, %p986_p1 }
  0x15   : > { %p984_p0 = pneg %p983_p13 }
  0x16   : > { %p990_p5 = por %p989_p4, %p988_p3 }
  0x18   : > { %p991_p6 = pnand %p990_p5, %p984_p0 }
  0x1a   : > { %994 = shalt.err (!%p991_p6)
}
  0x1b   : > { %s995_s20 = scalar_lea.vmem %s1153_s5, 512  ;;  %s1062_s21 = smov [#allocation4]  }
  0x1c   : > { %p996_p8 = scmp.ne.s32.totalorder %s1153_s5, %s995_s20  ;;  %s1000_s22 = sshll.u32 %s1062_s21, 4  ;;  %s1001_s22 = int_to_ptr.vmem [resolvable:$false] %s1000_s22 }
  0x1d   : > { %s1002_s25 = scalar_lea.vmem %s1001_s22, 1024  ;;  %p1003_p10 = scmp.lt.s32.totalorder %s1153_s5, %s1001_s22 }
  0x1e   : > { %p998_p11 = pnand %p996_p8, %p982_p12  ;;  %p1004_p1 = scmp.lt.s32.totalorder %s1002_s25, %s995_s20 }
  0x20   : > { %p999_p13 = pneg %p998_p11  ;;  %p1005_p2 = por %p1004_p1, %p1003_p10 }
  0x22   : > { %p1006_p3 = pnand %p1005_p2, %p999_p13 }
  0x24   : > { %1009 = shalt.err (!%p1006_p3)
}
  0x25   : > { %s1063_s26 = smov 512   ;;  %s1064_s27 = smov 256  }
  0x26   : > { %s1065_s28 = smov 16   ;;  %p168_p12 = scmp.lt.s32.totalorder %s1060_s17, 3 }
  0x27   : > { %908 = dma.hbm_to_vmem [thread:$0]  (!%p1149_p9), %s1145_s30, 512, %s1153_s5, %s1156_s7, %s1063_s26, %s1064_s27, %s1065_s28  }
  0x28   : > { %p1240_p0 = scmp.ge.s32.totalorder %s1060_s17, 1 }
  0x2a   : > { %p169_p4 = pnand %p1240_p0, %p168_p12 }
  0x2b   : > { %s174_s29 = sand.u32 (!%p169_p4), 1, %s1044_s13  }
  0x2c   : > { %172 = sbr.rel (%p169_p4) target bundleno = 778 (0x30a), region = 32  ;;  %s864_s4 = sshll.u32 (!%p169_p4), %s174_s29, 5 }
  0x2d   : > { %s175_s8 = scalar_lea.sflag (!%p169_p4), [#allocation5], %s174_s29  ;;  %s178_s9 = scalar_lea.vmem (!%p169_p4), [#allocation4], %s864_s4 }
  0x33   : > { %1035 = dma.done.wait (%p1132_p7), %s175_s8, 512  }
  0x34   : > { %1037 = vsyncadd (%p1132_p7), %s175_s8, 4294966784  ;;  %v1066_v0 = vmov 0.0   ;;  %vm223_vm0 = vcmask 1040384   ;;  %vm219_vm1 = vcmask 72704   ;;  %v216_v1 = vld [vmem:[%s178_s9 + $0x8] sm:$0xff]  ;;  %v215_v3 = vld [vmem:[%s178_s9] sm:$0xff] }
  0x35   : > { %551 = vmatprep.mubr.f32.mxu0 %v1066_v0  ;;  %298 = vmatprep.mubr.f32.mxu1 %v1066_v0  ;;  %v218_v2 = vld [vmem:[%s178_s9 + $0x18] sm:$0x1]  ;;  %v230_v5 = vand.u32 4294901760, %v216_v1  ;;  %v217_v6 = vld [vmem:[%s178_s9 + $0x10] sm:$0x1]  ;;  %v232_v7 = vand.u32 4294901760, %v215_v3 }
  0x36   : > { %v228_v4 = vsel %vm223_vm0, %v218_v2, 0  ;;  %v214_v8 = vld [vmem:[%s1233_s0] sm:$0xff]  ;;  %v225_v10 = vsel %vm223_vm0, %v217_v6, 0  ;;  %v1067_v42 = vmov 0   ;;  %vm210_vm2 = vcmask 7168   ;;  %p202_p7 = scmp.lt.s32.totalorder %s1052_s15, 1 }
  0x37   : > { %v234_v9 = vand.u32 4294901760, %v228_v4  ;;  %v221_v11 = vsel %vm219_vm1, %v214_v8, 0  ;;  %v311_v12 = vsub.f32 %v216_v1, %v230_v5  ;;  %v236_v13 = vand.u32 4294901760, %v225_v10  ;;  %964 = vset.pattern.permute.xlu0 %v1067_v42  ;;  %965 = vset.pattern.permute.xlu1 %v1067_v42  ;;  %v213_v50 = vld [vmem:[%s1234_s1] sm:$0xff]  ;;  %212 = vst.msk [vmem:[#allocation3] sm:$0xff] %vm210_vm2, %v1066_v0 }
  0x38   : > { %v317_v14 = vsub.f32 %v215_v3, %v232_v7  ;;  %v299_v15 = vand.u32 4294901760, %v221_v11  ;;  %v1068_v51 = vmov 1e+30   ;;  %s1249_s15 = smov (!%p202_p7, %s1052_s15), 1 }
  0x39   : > { %v869_v16 = vpack.c.bf16 %v234_v9, %v230_v5  ;;  %v323_v17 = vsub.f32 %v228_v4, %v234_v9  ;;  %v871_v18 = vpack.c.bf16 %v236_v13, %v232_v7  ;;  %v329_v19 = vsub.f32 %v225_v10, %v236_v13  ;;  %211 = vst.msk [vmem:[#allocation2] sm:$0xff] %vm210_vm2, %v1068_v51  ;;  %s865_s7 = sshll.u32 %s1249_s15, 3 }
  0x3a   : > { %v300_v20 = vsub.f32 %v221_v11, %v299_v15  ;;  %v312_v21 = vand.u32 4294901760, %v311_v12  ;;  %v318_v23 = vand.u32 4294901760, %v317_v14  ;;  %s205_s12 = scalar_lea.vmem %s1236_s3, %s865_s7 }
  0x3b   : > { %882 = vmatprep.subr.bf16.mxu0 %v869_v16  ;;  %870 = vmatprep.subr.bf16.mxu1 %v869_v16  ;;  %v324_v22 = vand.u32 4294901760, %v323_v17  ;;  %v330_v26 = vand.u32 4294901760, %v329_v19  ;;  %v877_v39 = vpack.c.bf16 %v323_v17, %v311_v12  ;;  %v879_v41 = vpack.c.bf16 %v329_v19, %v317_v14 }
  0x3c   : > { %884 = vmatpush1.bf16.msra.mxu0 %v871_v18  ;;  %872 = vmatpush1.bf16.msra.mxu1 %v871_v18  ;;  %v301_v24 = vand.u32 4294901760, %v300_v20  ;;  %v313_v25 = vsub.f32 %v311_v12, %v312_v21  ;;  %v319_v29 = vsub.f32 %v317_v14, %v318_v23 }
  0x3d   : > { %v325_v27 = vsub.f32 %v323_v17, %v324_v22  ;;  %v885_v28 = vpack.c.bf16 %v324_v22, %v312_v21  ;;  %v331_v32 = vsub.f32 %v329_v19, %v330_v26  ;;  %v887_v33 = vpack.c.bf16 %v330_v26, %v318_v23 }
  0x3e   : > { %v302_v30 = vsub.f32 %v300_v20, %v301_v24  ;;  %v314_v31 = vand.u32 4294901760, %v313_v25  ;;  %v320_v35 = vand.u32 4294901760, %v319_v29 }
  0x3f   : > { %555 = vmatmul.mubr.f32.vlgmr.msra.gmra.mrb[0].mxu0 %v301_v24  ;;  %v326_v34 = vand.u32 4294901760, %v325_v27  ;;  %886 = vmatprep.subr.bf16.mxu0 %v885_v28  ;;  %v332_v37 = vand.u32 4294901760, %v331_v32 }
  0x40   : > { %v303_v36 = vand.u32 4294901760, %v302_v30  ;;  %888 = vmatpush1.bf16.msra.mxu0 %v887_v33  ;;  %637 = vmatprep.mubr.f32.mxu0 %v1066_v0  ;;  %v746_v58 = vld [vmem:[#allocation2] sm:$0xff] }
  0x41   : > { %v873_v38 = vpack.c.bf16 %v326_v34, %v314_v31  ;;  %890 = vmatprep.subr.bf16.mxu0 %v869_v16  ;;  %v875_v40 = vpack.c.bf16 %v332_v37, %v320_v35 }
  0x42   : > { %304 = vmatmul.mubr.f32.vlgmr.msra.gmra.mrb[0].mxu1 %v303_v36 }
  0x43   : > { %874 = vmatprep.subr.bf16.mxu1 %v873_v38  ;;  %394 = vmatprep.mubr.f32.mxu1 %v1066_v0 }
  0x44   : > { %876 = vmatpush1.bf16.msra.mxu1 %v875_v40 }
  0x45   : > { %878 = vmatprep.subr.bf16.mxu1 %v877_v39 }
  0x47   : > { %639 = vmatmul.mubr.f32.vlgmr.msra.gmra.mrb[0].mxu0 %v299_v15 }
  0x48   : > { %892 = vmatpush1.bf16.msra.mxu0 %v871_v18  ;;  %713 = vmatprep.mubr.f32.mxu0 %v1066_v0 }
  0x4a   : > { %396 = vmatmul.mubr.f32.vlgmr.msra.gmra.mrb[0].mxu1 %v299_v15 }
  0x4b   : > { %880 = vmatpush1.bf16.msra.mxu1 %v879_v41  ;;  %474 = vmatprep.mubr.f32.mxu1 %v1066_v0 }
  0x4f   : > { %715 = vmatmul.mubr.f32.vlgmr.msra.gmra.mrb[0].mxu0 %v299_v15 }
  0x52   : > { %477 = vmatmul.mubr.f32.vlgmr.msra.gmra.mrb[0].mxu1 %v300_v20  ;;  %v767_v20 = vld [vmem:[#allocation3] sm:$0xff] }
 0x122   : > { %v716_v43 = vpop.f32.mrb[0].mxu0 }
 0x123   : > { %v718_v44 = vpop.f32.mrb[1].mxu0 }
 0x125   : > { %v478_v45 = vpop.f32.mrb[0].mxu1 }
 0x126   : > { %v893_v46 = vadd.f32 %v716_v43, %v478_v45  ;;  %v480_v47 = vpop.f32.mrb[1].mxu1 }
 0x127   : > { %v894_v48 = vadd.f32 %v718_v44, %v480_v47 }
 0x129   : > { %v721_v49 = vmax.f32 %v893_v46, %v894_v48 }
 0x12b   : > { %722 = vmax.xlane.f32.xlu0 %v721_v49 }
 0x141   : > { %735 = vperm.xlu0 %964, %v213_v50  }
 0x1b8   : > { %v723_v52 = vpop.xlane.xlu0 %722 }
 0x1b9   : > { %v724_v53 = vsub.f32 %v213_v50, %v723_v52 }
 0x1bb   : > { %v725_v54 = vmax.f32 %v724_v53, 1e-08 }
 0x1bd   : > { %966 = vrsqrt.f32 %v725_v54  ;;  %vm728_vm3 = vcmp.eq.f32.partialorder %v725_v54, inf  ;;  %v731_v57 = vand.u32 2147483648, %v725_v54  ;;  %vm730_vm4 = vcmp.eq.f32.partialorder %v725_v54, 0.0 }
 0x1c0   : > { %v736_v63 = vpop.permute.xlu0 %735 }
 0x1c1   : > { %v738_v1 = vsub.f32 %v736_v63, %v893_v46  ;;  %v739_v0 = vsub.f32 %v736_v63, %v894_v48 }
 0x1c3   : > { %v740_v2 = vmax.f32 %v738_v1, 1e-08  ;;  %v741_v3 = vmax.f32 %v739_v0, 1e-08 }
 0x1c5   : > { %968 = vrsqrt.f32 %v740_v2 }
 0x1c6   : > { %970 = vrsqrt.f32 %v741_v3 }
 0x1c7   : > { %v967_v55 = vpop.eup %966 }
 0x1c8   : > { %v727_v56 = vmul.f32 %v967_v55, %v725_v54 }
 0x1ca   : > { %v729_v59 = vsel %vm728_vm3, %v725_v54, %v727_v56 }
 0x1cb   : > { %v732_v60 = vsel %vm730_vm4, %v731_v57, %v729_v59 }
 0x1cc   : > { %v747_v61 = vmin.f32 %v746_v58, %v732_v60 }
 0x1ce   : > { %753 = vperm.xlu1 %965, %v747_v61   ;;  %v748_v62 = vsub.f32 %v747_v61, %v746_v58  ;;  %772 = vst.msk [vmem:[#allocation2] sm:$0xff] %vm210_vm2, %v747_v61 }
 0x1cf   : > { %v969_v4 = vpop.eup %968 }
 0x1d0   : > { %v971_v5 = vpop.eup %970  ;;  %v744_v6 = vmul.f32 %v969_v4, %v740_v2  ;;  %v749_v18 = vmul.f32 1.442695, %v748_v62 }
 0x1d1   : > { %v745_v7 = vmul.f32 %v971_v5, %v741_v3 }
 0x1d5   : > { %v779_v27 = vld [vmem:[#allocation2] sm:$0xff] }
 0x24d   : > { %v754_v8 = vpop.permute.xlu1 %753 }
 0x24e   : > { %v756_v9 = vsub.f32 %v754_v8, %v744_v6  ;;  %v757_v10 = vsub.f32 %v754_v8, %v745_v7 }
 0x250   : > { %v758_v11 = vmul.f32 1.442695, %v756_v9  ;;  %v760_v12 = vmul.f32 1.442695, %v757_v10 }
 0x252   : > { %972 = vpow2.f32 %v758_v11 }
 0x253   : > { %974 = vpow2.f32 %v760_v12 }
 0x254   : > { %976 = vpow2.f32 %v749_v18 }
 0x25c   : > { %v973_v13 = vpop.eup %972 }
 0x25d   : > { %v975_v14 = vpop.eup %974  ;;  %v762_v15 = vmul.f32 %v973_v13, %v969_v4 }
 0x25e   : > { %v763_v16 = vmul.f32 %v975_v14, %v971_v5  ;;  %v977_v19 = vpop.eup %976 }
 0x25f   : > { %v768_v21 = vmul.f32 %v977_v19, %v767_v20 }
 0x260   : > { %v764_v17 = vadd.f32 %v763_v16, %v762_v15 }
 0x262   : > { %765 = vadd.xlane.f32.xlu1 %v764_v17 }
 0x2ef   : > { %v766_v22 = vpop.xlane.xlu1 %765 }
 0x2f0   : > { %v769_v23 = vadd.f32 %v768_v21, %v766_v22 }
 0x2f2   : > { %771 = vst.msk [vmem:[#allocation3] sm:$0xff] %vm210_vm2, %v769_v23 }
 0x2f9   : > { %v776_v24 = vld [vmem:[#allocation3] sm:$0xff] }
 0x2fa   : > { %978 = vlog2.f32 %v776_v24 }
 0x304   : > { %v979_v25 = vpop.eup %978 }
 0x305   : > { %v778_v26 = vmul.f32 0.6931472, %v979_v25 }
 0x307   : > { %v780_v28 = vsub.f32 %v778_v26, %v779_v27 }
 0x309   : > { %781 = vst.msk [vmem:[%s205_s12] sm:$0xff] %vm210_vm2, %v780_v28 }
 0x30a PF: > { %s16_s17 = sadd.s32 1, %s1060_s17   ;;  %s1241_s12 = smov %s1044_s13 }
 0x30b   : > { %p13_p9 = scmp.ge.s32.totalorder %s16_s17, 4   ;;  %s1242_s13 = smov %s1048_s14 }
 0x30c   : > { %s1243_s14 = smov %s1138_s24  ;;  %s1244_s15 = smov %s1056_s16 }
 0x30d   : > { %s1245_s16 = smov %s1247_s19  ;;  %15 = sbr.rel (!%p13_p9) target bundleno = 4 (0x4), region = 80 }
 0x314   :  { %801 = vsyncpa [#allocation5], 1 }
 0x315   :  { %803 = vsyncpa [#allocation5 + $0x1], 1 }

</bundles_post_ra>
